<compile_context>
chip_gen: v5e
topology: v5e:2x2
jax: 0.10.0
libtpu: 0.0.40
codegen_flags: <defaults>
</compile_context>

<pallas_src>
import functools

import jax
import jax.numpy as jnp
from jax.experimental import pallas as pl
from jax.experimental.pallas import tpu as pltpu


def _attention_kernel(x_ref, w_ref, o_ref, m_sc, l_sc, acc_sc, *, seq_len, ts):
    # x_ref block: (TS, TB, H)   w_ref block: (1, H)   o_ref block: (TB, H)
    # scratch:     m_sc (TB,1)   l_sc (TB,1)           acc_sc (TB, H)
    s_idx = pl.program_id(1)

    @pl.when(s_idx == 0)
    def _():
        m_sc[...] = jnp.full_like(m_sc, -jnp.inf)
        l_sc[...] = jnp.zeros_like(l_sc)
        acc_sc[...] = jnp.zeros_like(acc_sc)

    x = x_ref[...]                                    # (TS, TB, H)
    w = w_ref[...]                                    # (1, H)

    # Mask padded sequence rows of a partial last chunk (static check: no code is
    # emitted when TS divides S). Padded batch columns need no masking: every op
    # below is independent per batch column and partial output blocks only write
    # the valid region.
    partial_s = (seq_len % ts) != 0
    if partial_s:
        row = jax.lax.broadcasted_iota(jnp.int32, (ts, 1), 0)          # (TS, 1)
        valid_rows = (s_idx * ts + row) < seq_len
        x = jnp.where(valid_rows[:, :, None], x, 0.0)

    # scores[s, b] = sum_h x[s, b, h] * w[h]   (VPU mul + lane reduce over H; no MXU)
    scores = jnp.sum(x * w[None, :, :], axis=-1)                       # (TS, TB)
    scores_t = scores.T                                                # (TB, TS) lane-dense

    if partial_s:
        col = jax.lax.broadcasted_iota(jnp.int32, (1, ts), 1)          # (1, TS)
        scores_t = jnp.where(s_idx * ts + col < seq_len, scores_t, -jnp.inf)

    # Online softmax over the sequence axis (dim 0 of x == lane axis of scores_t).
    m_prev = m_sc[...]                                                 # (TB, 1)
    m_new = jnp.maximum(m_prev, jnp.max(scores_t, axis=-1, keepdims=True))
    alpha = jnp.exp(m_prev - m_new)                                    # (TB, 1)
    p = jnp.exp(scores_t - m_new)                                      # (TB, TS)

    l_sc[...] = alpha * l_sc[...] + jnp.sum(p, axis=-1, keepdims=True)
    # context chunk: sum_s p[b, s] * x[s, b, h]   (VPU mul + reduce over the chunk)
    acc_sc[...] = alpha * acc_sc[...] + jnp.sum(x * p.T[:, :, None], axis=0)
    m_sc[...] = m_new

    @pl.when(s_idx == pl.num_programs(1) - 1)
    def _():
        inv_l = pl.reciprocal(l_sc[...], approx=True)                  # (TB, 1), EUP
        o_ref[...] = (acc_sc[...] * inv_l).astype(o_ref.dtype)


def _vmem_caps():
    """(vmem_limit_bytes, tile_budget_bytes), generation-aware."""
    phys = 128 * 1024 * 1024
    try:
        phys = int(getattr(pltpu.get_tpu_info(), "vmem_capacity_bytes", phys))
    except Exception:
        pass
    if phys <= 64 * 1024 * 1024:
        # v7x-like: 64 MiB physical per TensorCore -> leave headroom for Mosaic scratch.
        return 48 * 1024 * 1024, 12 * 1024 * 1024
    # v5e / v6e: 128 MiB physical.
    return 64 * 1024 * 1024, 32 * 1024 * 1024


def _pick_tiles(S, B, H, itemsize, tile_budget):
    """Pick (TB, TS) for the (TS, TB, H) x block."""
    if B <= 8:
        tb = B  # block dim equal to the full dim is always layout-legal
    else:
        # Multiple of 8, capped at 128, and capped so the batch grid axis has >= 2
        # steps (lets the "parallel" axis shard across v7x's two TensorCores).
        tb = max(8, min(((B // 2) // 8) * 8, 128))

    # Sequence tile: bound the resident working set. Factor 4 ~= double-buffered x
    # block + materialized elementwise temporaries (x*w, p, x*attn) in the body.
    per_row = 4 * tb * H * itemsize
    ts = max(1, tile_budget // per_row)
    if ts >= S:
        ts = S
    elif ts >= 8:
        ts = (ts // 8) * 8
    return tb, ts


def simple_attention(x, weight, bias=None):
    """x: (S, B, H); weight: (1, H) (PyTorch nn.Linear layout). Bias is ignored because
    softmax(z + b) == softmax(z) (exact shift invariance for out_features == 1).
    Returns (B, H)."""
    S, B, H = x.shape
    w_row = jnp.asarray(weight).reshape(1, H)

    vmem_limit, tile_budget = _vmem_caps()
    TB, TS = _pick_tiles(S, B, H, x.dtype.itemsize, tile_budget)
    nb = pl.cdiv(B, TB)
    ns = pl.cdiv(S, TS)

    kernel = functools.partial(_attention_kernel, seq_len=S, ts=TS)

    return pl.pallas_call(
        kernel,
        out_shape=jax.ShapeDtypeStruct((B, H), x.dtype),
        grid_spec=pltpu.PrefetchScalarGridSpec(
            num_scalar_prefetch=0,
            grid=(nb, ns),                       # batch tiles (parallel), seq tiles (arbitrary)
            in_specs=[
                pl.BlockSpec((TS, TB, H), lambda b, s: (s, b, 0)),
                pl.BlockSpec((1, H), lambda b, s: (0, 0)),
            ],
            out_specs=pl.BlockSpec((TB, H), lambda b, s: (b, 0)),   # constant over s -> resident
            scratch_shapes=[
                pltpu.VMEM((TB, 1), jnp.float32),   # running max m
                pltpu.VMEM((TB, 1), jnp.float32),   # running denom l
                pltpu.VMEM((TB, H), jnp.float32),   # running context acc
            ],
        ),
        compiler_params=pltpu.CompilerParams(
            dimension_semantics=("parallel", "arbitrary"),
            vmem_limit_bytes=vmem_limit,
        ),
    )(x, w_row)


def simple_attention_ref(x, weight, bias):
    # pure-JAX reference of the PyTorch forward (bias included, as in nn.Linear)
    scores = jnp.einsum("sbh,oh->sbo", x, weight) + bias               # (S, B, 1)
    attn = jax.nn.softmax(scores, axis=0)                              # softmax over dim 0
    return jnp.sum(x * attn, axis=0)                                   # (B, H)


if __name__ == "__main__":
    S, B, H = 8, 2, 32  # seq, batch, hidden
    key = jax.random.PRNGKey(0)
    kx, kw, kb = jax.random.split(key, 3)

    x = jax.random.normal(kx, (S, B, H), dtype=jnp.float32)
    # deterministic synthetic init of nn.Linear(hidden_size, 1) params
    weight = (jax.random.normal(kw, (1, H), dtype=jnp.float32) / jnp.sqrt(H)).astype(jnp.float32)
    bias = (jax.random.normal(kb, (1,), dtype=jnp.float32) * 0.1).astype(jnp.float32)

    out = simple_attention(x, weight, bias)
    out = jax.block_until_ready(out)

    ref = simple_attention_ref(x, weight, bias)
    assert out.shape == (B, H)
    assert jnp.allclose(out, ref, rtol=2e-2, atol=2e-2), "mismatch vs reference"

    print("KERNEL_OK")
</pallas_src>

<mosaic_0001>
module attributes {stable_mosaic.version = 11 : i64} {
  func.func @_attention_kernel(%arg0: i32, %arg1: i32, %arg2: memref<8x2x32xf32, #tpu.memory_space<vmem>>, %arg3: memref<1x32xf32, #tpu.memory_space<vmem>>, %arg4: memref<2x32xf32, #tpu.memory_space<vmem>>, %arg5: memref<2x1xf32, #tpu.memory_space<vmem>>, %arg6: memref<2x1xf32, #tpu.memory_space<vmem>>, %arg7: memref<2x32xf32, #tpu.memory_space<vmem>>) attributes {dimension_semantics = [#tpu.dimension_semantics<parallel>, #tpu.dimension_semantics<arbitrary>], iteration_bounds = array<i64: 1, 1>, scalar_prefetch = 0 : i64, scratch_operands = 3 : i64, tpu.core_type = #tpu.core_type<tc>, window_params = [{transform_indices = @transform_0, window_bounds = array<i64: 8, 2, 32>}, {pipeline_mode = #tpu.pipeline_mode<synchronous>, transform_indices = @transform_1, window_bounds = array<i64: 1, 32>}, {transform_indices = @transform_2, window_bounds = array<i64: 2, 32>}]} {
    %c0_i32 = arith.constant 0 : i32
    %0 = arith.cmpi eq, %arg1, %c0_i32 : i32
    %1 = arith.extui %0 : i1 to i32
    %c0_i32_0 = arith.constant 0 : i32
    %2 = arith.cmpi ne, %1, %c0_i32_0 : i32
    scf.if %2 {
      %cst_22 = arith.constant 0xFF800000 : f32
      %39 = vector.broadcast %cst_22 : f32 to vector<2x1xf32>
      %c0_23 = arith.constant 0 : index
      %c0_24 = arith.constant 0 : index
      %40 = vector.load %arg5[%c0_23, %c0_24] : memref<2x1xf32, #tpu.memory_space<vmem>>, vector<2x1xf32>
      tpu.vector_store %arg5[%c0_23, %c0_24], %39 {strides = array<i32>} : memref<2x1xf32, #tpu.memory_space<vmem>>, vector<2x1xf32>,
      %cst_25 = arith.constant 0.000000e+00 : f32
      %41 = vector.broadcast %cst_25 : f32 to vector<2x1xf32>
      %c0_26 = arith.constant 0 : index
      %c0_27 = arith.constant 0 : index
      %42 = vector.load %arg6[%c0_26, %c0_27] : memref<2x1xf32, #tpu.memory_space<vmem>>, vector<2x1xf32>
      tpu.vector_store %arg6[%c0_26, %c0_27], %41 {strides = array<i32>} : memref<2x1xf32, #tpu.memory_space<vmem>>, vector<2x1xf32>,
      %cst_28 = arith.constant 0.000000e+00 : f32
      %43 = vector.broadcast %cst_28 : f32 to vector<2x32xf32>
      %c0_29 = arith.constant 0 : index
      %c0_30 = arith.constant 0 : index
      %44 = vector.load %arg7[%c0_29, %c0_30] : memref<2x32xf32, #tpu.memory_space<vmem>>, vector<2x32xf32>
      tpu.vector_store %arg7[%c0_29, %c0_30], %43 {strides = array<i32>} : memref<2x32xf32, #tpu.memory_space<vmem>>, vector<2x32xf32>,
    } else {
    }
    %c0 = arith.constant 0 : index
    %c0_1 = arith.constant 0 : index
    %c0_2 = arith.constant 0 : index
    %3 = vector.load %arg2[%c0, %c0_1, %c0_2] : memref<8x2x32xf32, #tpu.memory_space<vmem>>, vector<8x2x32xf32>
    %c0_3 = arith.constant 0 : index
    %c0_4 = arith.constant 0 : index
    %4 = vector.load %arg3[%c0_3, %c0_4] : memref<1x32xf32, #tpu.memory_space<vmem>>, vector<1x32xf32>
    %5 = vector.shape_cast %4 : vector<1x32xf32> to vector<1x1x32xf32>
    %6 = vector.broadcast %5 : vector<1x1x32xf32> to vector<8x2x32xf32>
    %7 = arith.mulf %3, %6 : vector<8x2x32xf32>
    %cst = arith.constant dense<0.000000e+00> : vector<8x2xf32>
    %8 = vector.multi_reduction <add>, %7, %cst [2] : vector<8x2x32xf32> to vector<8x2xf32>
    %9 = tpu.transpose %8, [1, 0] : vector<8x2xf32> -> vector<2x8xf32>
    %c0_5 = arith.constant 0 : index
    %c0_6 = arith.constant 0 : index
    %10 = vector.load %arg5[%c0_5, %c0_6] : memref<2x1xf32, #tpu.memory_space<vmem>>, vector<2x1xf32>
    %cst_7 = arith.constant dense<0xFF800000> : vector<2xf32>
    %11 = vector.multi_reduction <maximumf>, %9, %cst_7 [1] : vector<2x8xf32> to vector<2xf32>
    %12 = vector.shape_cast %11 : vector<2xf32> to vector<2x1xf32>
    %13 = arith.maximumf %10, %12 : vector<2x1xf32>
    %14 = arith.subf %10, %13 : vector<2x1xf32>
    %15 = math.exp %14 : vector<2x1xf32>
    %16 = vector.broadcast %13 : vector<2x1xf32> to vector<2x8xf32>
    %17 = arith.subf %9, %16 : vector<2x8xf32>
    %18 = math.exp %17 : vector<2x8xf32>
    %c0_8 = arith.constant 0 : index
    %c0_9 = arith.constant 0 : index
    %19 = vector.load %arg6[%c0_8, %c0_9] : memref<2x1xf32, #tpu.memory_space<vmem>>, vector<2x1xf32>
    %20 = arith.mulf %15, %19 : vector<2x1xf32>
    %cst_10 = arith.constant dense<0.000000e+00> : vector<2xf32>
    %21 = vector.multi_reduction <add>, %18, %cst_10 [1] : vector<2x8xf32> to vector<2xf32>
    %22 = vector.shape_cast %21 : vector<2xf32> to vector<2x1xf32>
    %23 = arith.addf %20, %22 : vector<2x1xf32>
    %c0_11 = arith.constant 0 : index
    %c0_12 = arith.constant 0 : index
    %24 = vector.load %arg6[%c0_11, %c0_12] : memref<2x1xf32, #tpu.memory_space<vmem>>, vector<2x1xf32>
    tpu.vector_store %arg6[%c0_11, %c0_12], %23 {strides = array<i32>} : memref<2x1xf32, #tpu.memory_space<vmem>>, vector<2x1xf32>,
    %c0_13 = arith.constant 0 : index
    %c0_14 = arith.constant 0 : index
    %25 = vector.load %arg7[%c0_13, %c0_14] : memref<2x32xf32, #tpu.memory_space<vmem>>, vector<2x32xf32>
    %26 = vector.broadcast %15 : vector<2x1xf32> to vector<2x32xf32>
    %27 = arith.mulf %26, %25 : vector<2x32xf32>
    %28 = tpu.transpose %18, [1, 0] : vector<2x8xf32> -> vector<8x2xf32>
    %29 = vector.shape_cast %28 : vector<8x2xf32> to vector<8x2x1xf32>
    %30 = vector.broadcast %29 : vector<8x2x1xf32> to vector<8x2x32xf32>
    %31 = arith.mulf %3, %30 : vector<8x2x32xf32>
    %cst_15 = arith.constant dense<0.000000e+00> : vector<2x32xf32>
    %32 = vector.multi_reduction <add>, %31, %cst_15 [0] : vector<8x2x32xf32> to vector<2x32xf32>
    %33 = arith.addf %27, %32 : vector<2x32xf32>
    %c0_16 = arith.constant 0 : index
    %c0_17 = arith.constant 0 : index
    %34 = vector.load %arg7[%c0_16, %c0_17] : memref<2x32xf32, #tpu.memory_space<vmem>>, vector<2x32xf32>
    tpu.vector_store %arg7[%c0_16, %c0_17], %33 {strides = array<i32>} : memref<2x32xf32, #tpu.memory_space<vmem>>, vector<2x32xf32>,
    %c0_18 = arith.constant 0 : index
    %c0_19 = arith.constant 0 : index
    %35 = vector.load %arg5[%c0_18, %c0_19] : memref<2x1xf32, #tpu.memory_space<vmem>>, vector<2x1xf32>
    tpu.vector_store %arg5[%c0_18, %c0_19], %13 {strides = array<i32>} : memref<2x1xf32, #tpu.memory_space<vmem>>, vector<2x1xf32>,
    %c0_i32_20 = arith.constant 0 : i32
    %36 = arith.cmpi eq, %arg1, %c0_i32_20 : i32
    %37 = arith.extui %36 : i1 to i32
    %c0_i32_21 = arith.constant 0 : i32
    %38 = arith.cmpi ne, %37, %c0_i32_21 : i32
    scf.if %38 {
      %c0_22 = arith.constant 0 : index
      %c0_23 = arith.constant 0 : index
      %39 = vector.load %arg6[%c0_22, %c0_23] : memref<2x1xf32, #tpu.memory_space<vmem>>, vector<2x1xf32>
      %40 = tpu.reciprocal %39 {approx = true} : vector<2x1xf32> -> vector<2x1xf32>
      %c0_24 = arith.constant 0 : index
      %c0_25 = arith.constant 0 : index
      %41 = vector.load %arg7[%c0_24, %c0_25] : memref<2x32xf32, #tpu.memory_space<vmem>>, vector<2x32xf32>
      %42 = vector.broadcast %40 : vector<2x1xf32> to vector<2x32xf32>
      %43 = arith.mulf %41, %42 : vector<2x32xf32>
      %c0_26 = arith.constant 0 : index
      %c0_27 = arith.constant 0 : index
      %44 = vector.load %arg4[%c0_26, %c0_27] : memref<2x32xf32, #tpu.memory_space<vmem>>, vector<2x32xf32>
      tpu.vector_store %arg4[%c0_26, %c0_27], %43 {strides = array<i32>} : memref<2x32xf32, #tpu.memory_space<vmem>>, vector<2x32xf32>,
    } else {
    }
    return
  }
  func.func @transform_0(%arg0: i32, %arg1: i32) -> (i32, i32, i32) {
    %c0_i32 = arith.constant 0 : i32
    %c0_i32_0 = arith.constant 0 : i32
    return %arg1, %arg0, %c0_i32 : i32, i32, i32
  }
  func.func @transform_1(%arg0: i32, %arg1: i32) -> (i32, i32) {
    %c0_i32 = arith.constant 0 : i32
    %c0_i32_0 = arith.constant 0 : i32
    %c0_i32_1 = arith.constant 0 : i32
    return %c0_i32, %c0_i32_0 : i32, i32
  }
  func.func @transform_2(%arg0: i32, %arg1: i32) -> (i32, i32) {
    %c0_i32 = arith.constant 0 : i32
    %c0_i32_0 = arith.constant 0 : i32
    return %arg0, %c0_i32 : i32, i32
  }
}

</mosaic_0001>

<bundles_post_ra>
// kernel: tpu_custom_call.1
= control target key start
LH: loop header
LB: loop body
LE: loop exit
PB: predicated region body
PF: predicated region fallthrough
CT: control target
= control target key end

     0   :  { %7 = vsyncpa [#allocation6], 0  ;;  %s526_s0 = inlined_call_operand.hbm [shape: f32[8,2,32], index: 0, kind: input, shape index: {}]   ;;  %s527_s1 = inlined_call_operand.hbm [shape: f32[1,32], index: 1, kind: input, shape index: {}]   ;;  %s528_s2 = inlined_call_operand.hbm [shape: f32[2,32], index: 2, kind: output, shape index: {}]  }
   0x1   :  { %8 = vsyncpa [#allocation9], 0 }
   0x2   :  { %9 = vsyncpa [#allocation7], 0  ;;  %s14_s11 = sshll.u32 %s526_s0, 4  ;;  %s437_s12 = smov [#allocation5]   ;;  %s15_s11 = int_to_ptr.hbm [resolvable:$true] %s14_s11 }
   0x3   :  { %s16_s13 = sshll.u32 %s437_s12, 4  ;;  %s28_s16 = sshll.u32 %s527_s1, 4  ;;  %s17_s13 = int_to_ptr.vmem [resolvable:$true] %s16_s13  ;;  %s29_s16 = int_to_ptr.hbm [resolvable:$true] %s28_s16 }
   0x4   :  { %s438_s17 = smov 32   ;;  %s439_s18 = smov 2  }
   0x5   :  { %22 = dma.hbm_to_vmem [thread:$0]  %s15_s11, 256, %s17_s13, [#allocation6], %s438_s17, %s438_s17, %s439_s18  }
   0x6   :  { %s440_s19 = smov [#allocation8]  }
   0x7   :  { %s30_s20 = sshll.u32 %s440_s19, 4  ;;  %s31_s20 = int_to_ptr.vmem [resolvable:$true] %s30_s20 }
   0x8   :  { %33 = dma.hbm_to_vmem [thread:$0]  %s29_s16, 16, %s31_s20, [#allocation9]  }
   0x9   :  { %431 = dma.done.wait [#allocation6], 256  }
   0xa   :  { %432 = vsyncadd [#allocation6], 4294967040 }
   0xb   :  { %433 = dma.done.wait [#allocation9], 16  }
   0xc   :  { %434 = vsyncadd [#allocation9], 4294967280  ;;  %v466_v0 = vld [vmem:[#allocation5] sm:$0x3]  ;;  %v352_v1 = vld [vmem:[#allocation8] ss:$0 sm:$0xff]  ;;  %v104_v27 = vlaneseq }
   0xd   :  { %vm49_vm0 = vcmask 254976   ;;  %v468_v2 = vld [vmem:[#allocation5 + $0x4] sm:$0x3]  ;;  %v470_v3 = vld [vmem:[#allocation5 + $0x8] sm:$0x3]  ;;  %v63_v4 = vmul.f32 %v352_v1, %v466_v0  ;;  %vm114_vm1 = vcmask 1041409  }
   0xe   :  { %v65_v5 = vmul.f32 %v352_v1, %v468_v2  ;;  %v67_v6 = vmul.f32 %v352_v1, %v470_v3  ;;  %v475_v7 = vld [vmem:[#allocation5 + $0x2] sm:$0x3]  ;;  %v477_v8 = vld [vmem:[#allocation5 + $0x6] sm:$0x3]  ;;  %v482_v12 = vld [vmem:[#allocation5 + $0xa] sm:$0x3] }
   0xf   :  { %v72_v9 = vsel %vm49_vm0, %v63_v4, 0.0  ;;  %v64_v13 = vmul.f32 %v352_v1, %v475_v7  ;;  %v66_v14 = vmul.f32 %v352_v1, %v477_v8  ;;  %v68_v15 = vmul.f32 %v352_v1, %v482_v12  ;;  %v490_v19 = vld [vmem:[#allocation5 + $0xc] sm:$0x3]  ;;  %v492_v20 = vld [vmem:[#allocation5 + $0xe] sm:$0x3]  ;;  %s444_s0 = smov [#allocation10]  }
  0x10   :  { %v78_v10 = vsel %vm49_vm0, %v65_v5, 0.0  ;;  %v84_v11 = vsel %vm49_vm0, %v67_v6, 0.0  ;;  %73 = vadd.xlane.f32.xlu0 %v72_v9  ;;  %v69_v21 = vmul.f32 %v352_v1, %v490_v19  ;;  %v70_v22 = vmul.f32 %v352_v1, %v492_v20  ;;  %s325_s1 = sshll.u32 %s444_s0, 4  ;;  %s327_s23 = sshll.u32 %s528_s2, 4  ;;  %s326_s1 = int_to_ptr.vmem [resolvable:$true] %s325_s1  ;;  %s328_s23 = int_to_ptr.hbm [resolvable:$true] %s327_s23 }
  0x11   :  { %79 = vadd.xlane.f32.xlu1 %v78_v10  ;;  %85 = vadd.xlane.f32.xlu2 %v84_v11  ;;  %v75_v16 = vsel %vm49_vm0, %v64_v13, 0.0  ;;  %v81_v17 = vsel %vm49_vm0, %v66_v14, 0.0  ;;  %v87_v18 = vsel %vm49_vm0, %v68_v15, 0.0  ;;  %v105_v29 = vand.u32 127, %v104_v27 }
  0x12   :  { %v90_v23 = vsel %vm49_vm0, %v69_v21, 0.0  ;;  %v93_v24 = vsel %vm49_vm0, %v70_v22, 0.0  ;;  %vm116_vm2 = vcmask 1042434   ;;  %vm118_vm3 = vcmask 1043459  }
  0x13   :  { %vm120_vm4 = vcmask 1044484   ;;  %vm122_vm5 = vcmask 1045509   ;;  %vm124_vm6 = vcmask 1046534   ;;  %vm126_vm7 = vcmask 1047559  }
  0x14   :  { %vm46_vm8 = vcmask 1024   ;;  %v441_v50 = vmov -inf   ;;  %vm162_vm9 = vcmask 58368   ;;  %v442_v53 = vmov 0  }
  0x15   :  { %47 = vst.msk [vmem:[#allocation2] sm:$0x3] %vm46_vm8, %v441_v50  ;;  %346 = vset.pattern.permute.xlu1 %v442_v53  ;;  %347 = vset.pattern.permute.xlu0 %v442_v53  ;;  %v443_v54 = vmov 0.0   ;;  %v227_v5 = vshrl.u32 %v104_v27, 7 }
  0x16   :  { %50 = vst.msk [vmem:[#allocation4] sm:$0x3] %vm49_vm0, %v443_v54 }
  0x17   :  { %48 = vst.msk [vmem:[#allocation3] sm:$0x3] %vm46_vm8, %v443_v54 }
  0x18   :  { %76 = vadd.xlane.f32.xlu0 %v75_v16 }
  0x19   :  { %82 = vadd.xlane.f32.xlu1 %v81_v17  ;;  %88 = vadd.xlane.f32.xlu2 %v87_v18 }
  0x1c   :  { %v161_v55 = vld [vmem:[#allocation2] sm:$0x3] }
  0x1d   :  { %v186_v50 = vld [vmem:[#allocation4] sm:$0x3] }
  0x1e   :  { %v178_v9 = vld [vmem:[#allocation3] sm:$0x3] }
  0x20   :  { %91 = vadd.xlane.f32.xlu0 %v90_v23 }
  0x21   :  { %94 = vadd.xlane.f32.xlu1 %v93_v24 }
  0x83   :  { %v74_v25 = vpop.xlane.xlu0 %73 }
  0x84   :  { %v80_v26 = vpop.xlane.xlu1 %79  ;;  %v86_v28 = vpop.xlane.xlu2 %85  ;;  %v106_v32 = vperm.slane %v74_v25, %v105_v29 }
  0x85   :  { %v108_v35 = vperm.slane %v80_v26, %v105_v29  ;;  %v110_v39 = vperm.slane %v86_v28, %v105_v29 }
  0x8b   :  { %v77_v30 = vpop.xlane.xlu0 %76 }
  0x8c   :  { %v83_v31 = vpop.xlane.xlu1 %82  ;;  %v107_v33 = vperm.slane %v77_v30, %v105_v29  ;;  %v89_v37 = vpop.xlane.xlu2 %88 }
  0x8d   :  { %v109_v34 = vperm.slane %v83_v31, %v105_v29  ;;  %v111_v41 = vperm.slane %v89_v37, %v105_v29 }
  0x8e   :  { %v115_v36 = vsel %vm114_vm1, %v107_v33, %v106_v32 }
  0x8f   :  { %v117_v38 = vsel %vm116_vm2, %v108_v35, %v115_v36 }
  0x90   :  { %v119_v40 = vsel %vm118_vm3, %v109_v34, %v117_v38 }
  0x91   :  { %v121_v42 = vsel %vm120_vm4, %v110_v39, %v119_v40 }
  0x92   :  { %v123_v47 = vsel %vm122_vm5, %v111_v41, %v121_v42 }
  0x93   :  { %v92_v43 = vpop.xlane.xlu0 %91 }
  0x94   :  { %v95_v44 = vpop.xlane.xlu1 %94  ;;  %v112_v45 = vperm.slane %v92_v43, %v105_v29 }
  0x95   :  { %v113_v46 = vperm.slane %v95_v44, %v105_v29 }
  0x96   :  { %v125_v48 = vsel %vm124_vm6, %v112_v45, %v123_v47 }
  0x97   :  { %v127_v49 = vsel %vm126_vm7, %v113_v46, %v125_v48 }
  0x98   :  { %129 = vxpose.xlu2.b32.start.end [1/1] (short) (narrow) %v127_v49, 8 }
  0xfa   :  { %348 = vset.pattern.permute.xlu2 %v227_v5 }
 0x131   :  { %v145_v51 = vpop.trf.xlu2 }
 0x132   :  { %v163_v52 = vsel %vm162_vm9, %v145_v51, -inf }
 0x133   :  { %164 = vmax.xlane.f32.xlu0 %v163_v52 }
 0x1a6   :  { %v165_v56 = vpop.xlane.xlu0 %164 }
 0x1a7   :  { %v166_v57 = vmax.f32 %v161_v55, %v165_v56 }
 0x1a9   :  { %v167_v58 = vsub.f32 %v161_v55, %v166_v57  ;;  %306 = vst.msk [vmem:[#allocation2] sm:$0x3] %vm46_vm8, %v166_v57  ;;  %172 = vperm.xlu1 %346, %v166_v57  }
 0x1ab   :  { %v168_v59 = vmul.f32 1.442695, %v167_v58 }
 0x1ad   :  { %353 = vpow2.f32 %v168_v59 }
 0x1b3   :  { %v354_v60 = vpop.eup %353 }
 0x1b4   :  { %189 = vperm.xlu0 %347, %v354_v60   ;;  %v179_v10 = vmul.f32 %v354_v60, %v178_v9 }
 0x1bc   :  { %349 = vset.pattern.permute.xlu0 %v227_v5 }
 0x21b   :  { %v173_v61 = vpop.permute.xlu1 %172 }
 0x21c   :  { %v175_v62 = vsub.f32 %v145_v51, %v173_v61 }
 0x21e   :  { %v176_v63 = vmul.f32 1.442695, %v175_v62 }
 0x220   :  { %355 = vpow2.f32 %v176_v63 }
 0x226   :  { %v356_v1 = vpop.eup %355  ;;  %v190_v6 = vpop.permute.xlu0 %189 }
 0x227   :  { %193 = vxpose.xlu1.b32.start.end [1/1] (short) (narrow) %v356_v1, 8  ;;  %v180_v4 = vsel %vm162_vm9, %v356_v1, 0.0  ;;  %v192_v52 = vmul.f32 %v190_v6, %v186_v50 }
 0x228   :  { %181 = vadd.xlane.f32.xlu0 %v180_v4 }
 0x27a   :  { %350 = vset.pattern.permute.xlu1 %v227_v5 }
 0x29b   :  { %v182_v11 = vpop.xlane.xlu0 %181 }
 0x29c   :  { %v183_v13 = vadd.f32 %v182_v11, %v179_v10 }
 0x29e   :  { %185 = vst.msk [vmem:[#allocation3] sm:$0x3] %vm46_vm8, %v183_v13 }
 0x2a5   :  { %v310_v25 = vld [vmem:[#allocation3] sm:$0x3] }
 0x2a6   :  { %357 = vrcp.f32 %v310_v25 }
 0x2ac   :  { %v358_v26 = vpop.eup %357 }
 0x2cb   :  { %v209_v14 = vpop.trf.xlu1 }
 0x2cc   :  { %v246_v15 = vperm.slane %v209_v14, 3  ;;  %v225_v16 = vperm.slane %v209_v14, 0  ;;  %v232_v17 = vperm.slane %v209_v14, 1  ;;  %v239_v18 = vperm.slane %v209_v14, 2 }
 0x2cd   :  { %v253_v21 = vperm.slane %v209_v14, 4  ;;  %v260_v22 = vperm.slane %v209_v14, 5  ;;  %v267_v23 = vperm.slane %v209_v14, 6  ;;  %v274_v24 = vperm.slane %v209_v14, 7 }
 0x2ce   :  { %251 = vperm.xlu1 %350, %v246_v15   ;;  %230 = vperm.xlu2 %348, %v225_v16  }
 0x2cf   :  { %237 = vperm.xlu0 %349, %v232_v17  }
 0x2d7   :  { %244 = vperm.xlu0 %349, %v239_v18  }
 0x2df   :  { %258 = vperm.xlu0 %349, %v253_v21  }
 0x2e7   :  { %265 = vperm.xlu0 %349, %v260_v22  }
 0x2ef   :  { %272 = vperm.xlu0 %349, %v267_v23  }
 0x2f7   :  { %279 = vperm.xlu0 %349, %v274_v24  }
 0x2ff   :  { %351 = vset.pattern.permute.xlu0 %v442_v53 }
 0x300   :  { %315 = vperm.xlu0 %351, %v358_v26  }
 0x328   :  { %v231_v30 = vpop.permute.xlu2 %230 }
 0x329   :  { %v281_v33 = vmul.f32 %v231_v30, %v466_v0 }
 0x32b   :  { %v289_v37 = vsel %vm49_vm0, %v281_v33, 0.0 }
 0x340   :  { %v252_v36 = vpop.permute.xlu1 %251 }
 0x341   :  { %v238_v27 = vpop.permute.xlu0 %237  ;;  %v284_v40 = vmul.f32 %v252_v36, %v477_v8 }
 0x342   :  { %v282_v31 = vmul.f32 %v238_v27, %v475_v7 }
 0x343   :  { %v294_v0 = vsel %vm49_vm0, %v284_v40, 0.0 }
 0x344   :  { %v290_v35 = vsel %vm49_vm0, %v282_v31, 0.0 }
 0x345   :  { %v291_v39 = vadd.f32 %v290_v35, %v289_v37 }
 0x349   :  { %v245_v28 = vpop.permute.xlu0 %244 }
 0x34a   :  { %v283_v34 = vmul.f32 %v245_v28, %v468_v2 }
 0x34c   :  { %v292_v38 = vsel %vm49_vm0, %v283_v34, 0.0 }
 0x34d   :  { %v293_v42 = vadd.f32 %v292_v38, %v291_v39 }
 0x34f   :  { %v295_v45 = vadd.f32 %v294_v0, %v293_v42 }
 0x351   :  { %v259_v29 = vpop.permute.xlu0 %258 }
 0x352   :  { %v285_v41 = vmul.f32 %v259_v29, %v470_v3 }
 0x354   :  { %v296_v2 = vsel %vm49_vm0, %v285_v41, 0.0 }
 0x355   :  { %v297_v47 = vadd.f32 %v296_v2, %v295_v45 }
 0x359   :  { %v266_v32 = vpop.permute.xlu0 %265 }
 0x35a   :  { %v286_v7 = vmul.f32 %v266_v32, %v482_v12 }
 0x35c   :  { %v298_v46 = vsel %vm49_vm0, %v286_v7, 0.0 }
 0x35d   :  { %v299_v49 = vadd.f32 %v298_v46, %v297_v47 }
 0x361   :  { %v273_v43 = vpop.permute.xlu0 %272 }
 0x362   :  { %v287_v44 = vmul.f32 %v273_v43, %v490_v19 }
 0x364   :  { %v300_v48 = vsel %vm49_vm0, %v287_v44, 0.0 }
 0x365   :  { %v301_v51 = vadd.f32 %v300_v48, %v299_v49 }
 0x369   :  { %v280_v8 = vpop.permute.xlu0 %279 }
 0x36a   :  { %v288_v3 = vmul.f32 %v280_v8, %v492_v20 }
 0x36c   :  { %v302_v12 = vsel %vm49_vm0, %v288_v3, 0.0 }
 0x36d   :  { %v303_v53 = vadd.f32 %v302_v12, %v301_v51 }
 0x36f   :  { %v304_v54 = vadd.f32 %v303_v53, %v192_v52 }
 0x371   :  { %305 = vst.msk [vmem:[#allocation4] sm:$0x3] %vm49_vm0, %v304_v54 }
 0x372   :  { %v316_v55 = vpop.permute.xlu0 %315 }
 0x378   :  { %v312_v19 = vld [vmem:[#allocation4] sm:$0x3] }
 0x379   :  { %v318_v56 = vmul.f32 %v316_v55, %v312_v19 }
 0x37b   :  { %319 = vst.msk [vmem:[#allocation10] sm:$0x3] %vm49_vm0, %v318_v56 }
 0x37c   :  { %330 = dma.vmem_to_hbm [thread:$0]  %s326_s1, 32, %s328_s23, [#allocation7]  }
 0x37d   :  { %435 = dma.done.wait [#allocation7], 32  }
 0x37e   :  { %436 = vsyncadd [#allocation7], 4294967264 }
 0x37f   :  { %335 = vsyncpa [#allocation6], 1 }
 0x380   :  { %336 = vsyncpa [#allocation9], 1 }
 0x381   :  { %337 = vsyncpa [#allocation7], 1 }

</bundles_post_ra>
